<compile_context>
chip_gen: v7x
topology: tpu7x:2x2x1
jax: 0.10.0
libtpu: 0.0.40
codegen_flags: <defaults>
</compile_context>

<pallas_src>
import math
from functools import partial

import jax
import jax.numpy as jnp
from jax.experimental import pallas as pl
from jax.experimental.pallas import tpu as pltpu


def _round_up(v, m):
    return ((v + m - 1) // m) * m


def _vmem_capacity_bytes():
    # Per-core VMEM capacity; conservative 64 MiB (v7x per-TC) fallback if unqueryable.
    try:
        return int(pltpu.get_tpu_info().vmem_capacity_bytes)
    except Exception:
        return 64 << 20


def _resident_spec(block_shape, index_map):
    # Grid-invariant operand: request single buffering (double-buffering a block whose
    # index never changes is pure VMEM waste). Fall back if pipeline_mode is unavailable.
    try:
        return pl.BlockSpec(block_shape, index_map, pipeline_mode=pl.Buffered(1))
    except Exception:
        return pl.BlockSpec(block_shape, index_map)


def _pick_row_tile(n, f, h_dim, c_pad, budget):
    """Largest row tile (multiple of 16, <=1024) whose worst-pass VMEM footprint fits
    `budget`. Footprints: double-buffered adj tile (bf16), single-buffered residents,
    double-buffered output tiles, plus the f32 upcast transient of pass 2."""
    n16 = _round_up(max(n, 16), 16)
    tm_cap = min(1024, n16)
    fitting = []
    for tm in range(16, tm_cap + 1, 16):
        n_pad = _round_up(n, tm)
        # prologue: x tile (bf16, dbl) + W1 resident (bf16) + xw1 out tile (bf16, dbl)
        p0 = 2 * tm * f * 2 + f * h_dim * 2 + 2 * tm * h_dim * 2
        # pass 1: adj tile (bf16, dbl) + xw1 resident (bf16) + W2 resident (f32)
        #         + hw2 out tile (f32, dbl)
        p1 = 2 * tm * n_pad * 2 + n_pad * h_dim * 2 + h_dim * c_pad * 4 + 2 * tm * c_pad * 4
        # pass 2: adj tile (bf16, dbl) + f32 upcast transient + hw2 resident (f32)
        #         + out tile (f32, dbl)
        p2 = 2 * tm * n_pad * 2 + tm * n_pad * 4 + n_pad * c_pad * 4 + 2 * tm * c_pad * 4
        if max(p0, p1, p2) <= budget:
            fitting.append((tm, n_pad))
    if not fitting:
        return 16, _round_up(n, 16)
    # Prefer reasonably large tiles (>=256 where possible), then minimal padding, then
    # the largest tile.
    prefer = [t for t in fitting if t[0] >= min(256, tm_cap)]
    pool = prefer or fitting
    return min(pool, key=lambda t: (t[1], -t[0]))


def _fused_fits(n_pad, f, h_dim, c_pad, cap):
    need = (n_pad * n_pad * (2 + 4)        # adj bf16 + f32 upcast for 2nd matmul
            + n_pad * f * 2                # x (bf16)
            + f * h_dim * 2                # W1 (bf16)
            + h_dim * c_pad * 4            # W2 (f32)
            + n_pad * h_dim * (4 + 4)      # xw1 / relu temporaries
            + n_pad * c_pad * (4 + 4))     # hw2 temporary + output
    return need <= int(0.35 * cap)


# ----------------------------- kernels ---------------------------------------

def _xw1_kernel(x_ref, w1_ref, xw1_ref):
    xw1_ref[...] = jnp.dot(
        x_ref[...], w1_ref[...], preferred_element_type=jnp.float32
    ).astype(xw1_ref.dtype)


def _layer1_kernel(adj_ref, xw1_ref, w2_ref, hw2_ref):
    # h_tile = relu(adj_tile @ xw1) in f32, then fold in @W2 (f32) so the full N x H
    # hidden never hits HBM and hw2 is stored un-rounded.
    h = jnp.dot(adj_ref[...], xw1_ref[...], preferred_element_type=jnp.float32)
    h = jnp.maximum(h, 0.0)
    hw2_ref[...] = jnp.dot(h, w2_ref[...], preferred_element_type=jnp.float32)


def _layer2_kernel(adj_ref, hw2_ref, out_ref):
    out_ref[...] = jnp.dot(
        adj_ref[...].astype(jnp.float32), hw2_ref[...],
        preferred_element_type=jnp.float32)


def _fused_kernel(x_ref, adj_ref, w1_ref, w2_ref, out_ref):
    xw1 = jnp.dot(x_ref[...], w1_ref[...], preferred_element_type=jnp.float32)
    h = jnp.dot(adj_ref[...], xw1.astype(jnp.bfloat16),
                preferred_element_type=jnp.float32)
    h = jnp.maximum(h, 0.0)
    hw2 = jnp.dot(h, w2_ref[...], preferred_element_type=jnp.float32)
    out_ref[...] = jnp.dot(adj_ref[...].astype(jnp.float32), hw2,
                           preferred_element_type=jnp.float32)


# ----------------------------- forward ---------------------------------------

@partial(jax.jit, static_argnames=("tm", "fused", "vmem_limit"))
def _gnnq_forward_impl(x, adj_p, w1, w2, *, tm, fused, vmem_limit):
    n, f = x.shape
    n_pad = adj_p.shape[0]
    h_dim = w1.shape[1]
    c = w2.shape[1]
    c_pad = _round_up(c, 128)

    # Per-call operand prep (adj is NOT re-cast/padded here -- it was prepared once).
    x_p = jnp.zeros((n_pad, f), jnp.bfloat16).at[:n, :].set(x.astype(jnp.bfloat16))
    w1_b = w1.astype(jnp.bfloat16)
    w2_p = jnp.zeros((h_dim, c_pad), jnp.float32).at[:, :c].set(w2.astype(jnp.float32))

    if fused:
        # Small-graph fast path: one launch, no intermediate HBM round-trips.
        out_p = pl.pallas_call(
            _fused_kernel,
            out_shape=jax.ShapeDtypeStruct((n_pad, c_pad), jnp.float32),
            in_specs=[
                pl.BlockSpec((n_pad, f), lambda: (0, 0)),
                pl.BlockSpec((n_pad, n_pad), lambda: (0, 0)),
                pl.BlockSpec((f, h_dim), lambda: (0, 0)),
                pl.BlockSpec((h_dim, c_pad), lambda: (0, 0)),
            ],
            out_specs=pl.BlockSpec((n_pad, c_pad), lambda: (0, 0)),
            compiler_params=pltpu.CompilerParams(vmem_limit_bytes=vmem_limit),
        )(x_p, adj_p, w1_b, w2_p)
        return out_p[:n, :c]

    grid = (n_pad // tm,)
    params = pltpu.CompilerParams(dimension_semantics=("parallel",),
                                  vmem_limit_bytes=vmem_limit)

    # ---- prologue: xw1 = x @ W1 (row-tiled) ---------------------------------
    xw1 = pl.pallas_call(
        _xw1_kernel,
        out_shape=jax.ShapeDtypeStruct((n_pad, h_dim), jnp.bfloat16),
        grid=grid,
        in_specs=[
            pl.BlockSpec((tm, f), lambda i: (i, 0)),
            _resident_spec((f, h_dim), lambda i: (0, 0)),
        ],
        out_specs=pl.BlockSpec((tm, h_dim), lambda i: (i, 0)),
        compiler_params=params,
        cost_estimate=pl.CostEstimate(
            flops=2 * n_pad * f * h_dim, transcendentals=0,
            bytes_accessed=n_pad * f * 2 + f * h_dim * 2 + n_pad * h_dim * 2),
    )(x_p, w1_b)

    # ---- pass 1: hw2 = relu(adj @ xw1) @ W2, streamed over adj row tiles ----
    hw2 = pl.pallas_call(
        _layer1_kernel,
        out_shape=jax.ShapeDtypeStruct((n_pad, c_pad), jnp.float32),
        grid=grid,
        in_specs=[
            pl.BlockSpec((tm, n_pad), lambda i: (i, 0)),      # adj row tile (streamed)
            _resident_spec((n_pad, h_dim), lambda i: (0, 0)),  # xw1 resident
            _resident_spec((h_dim, c_pad), lambda i: (0, 0)),  # W2 resident (f32)
        ],
        out_specs=pl.BlockSpec((tm, c_pad), lambda i: (i, 0)),
        compiler_params=params,
        cost_estimate=pl.CostEstimate(
            flops=2 * n_pad * n_pad * h_dim + 2 * n_pad * h_dim * c_pad,
            transcendentals=0,
            bytes_accessed=n_pad * n_pad * 2 + n_pad * h_dim * 2
                           + h_dim * c_pad * 4 + n_pad * c_pad * 4),
    )(adj_p, xw1, w2_p)

    # ---- pass 2: out = adj @ hw2, streamed over adj row tiles ---------------
    out_p = pl.pallas_call(
        _layer2_kernel,
        out_shape=jax.ShapeDtypeStruct((n_pad, c_pad), jnp.float32),
        grid=grid,
        in_specs=[
            pl.BlockSpec((tm, n_pad), lambda i: (i, 0)),       # adj row tile (streamed)
            _resident_spec((n_pad, c_pad), lambda i: (0, 0)),  # hw2 resident (f32)
        ],
        out_specs=pl.BlockSpec((tm, c_pad), lambda i: (i, 0)),
        compiler_params=params,
        cost_estimate=pl.CostEstimate(
            flops=2 * n_pad * n_pad * c_pad, transcendentals=0,
            bytes_accessed=n_pad * n_pad * 2 + n_pad * c_pad * 4 + n_pad * c_pad * 4),
    )(adj_p, hw2)

    # TODO(synk): training-mode dropout (F.dropout with p>0) and forward_aux/mixup paths
    # are not implemented; this matches GNNq.forward with training=False.
    return out_p[:n, :c]


def build_gnnq_forward(adj, *, num_feature, hidden_dim, num_class, force_streamed=False):
    """Mirrors GNNq.__init__(opt, adj): adjacency is a module constant, so its cast to
    bf16 + padding happens ONCE here; the returned jitted forward(x, w1, w2) reuses it."""
    adj = jnp.asarray(adj, jnp.float32)
    n = adj.shape[0]

    cap = _vmem_capacity_bytes()
    vmem_limit = int(cap * 0.90)          # explicit scoped-VMEM limit for Mosaic
    budget = int(cap * 0.70)              # what the tile picker targets (headroom kept)

    c_pad = _round_up(num_class, 128)
    tm, n_pad = _pick_row_tile(n, num_feature, hidden_dim, c_pad, budget)
    fused = (not force_streamed) and _fused_fits(n_pad, num_feature, hidden_dim, c_pad, cap)

    adj_p = jnp.zeros((n_pad, n_pad), jnp.bfloat16).at[:n, :n].set(
        adj.astype(jnp.bfloat16))
    adj_p = jax.block_until_ready(adj_p)  # materialize once, up front

    def forward(x, w1, w2):
        return _gnnq_forward_impl(x, adj_p, w1, w2,
                                  tm=tm, fused=fused, vmem_limit=vmem_limit)

    return forward


def gnnq_reference(x, adj, w1, w2):
    h = jnp.maximum(adj @ (x @ w1), 0.0)
    return adj @ (h @ w2)


if __name__ == "__main__":
    # Small synthetic graph consistent with the module's forward():
    #   opt['num_feature']=32, opt['hidden_dim']=32, opt['num_class']=8, N=64 nodes
    N, NUM_FEATURE, HIDDEN_DIM, NUM_CLASS = 64, 32, 32, 8

    key = jax.random.PRNGKey(0)
    kx, kadj, kw1, kw2 = jax.random.split(key, 4)

    # node features
    x = jax.random.normal(kx, (N, NUM_FEATURE), dtype=jnp.float32)

    # deterministic symmetric, row-normalized adjacency with self loops
    a = (jax.random.uniform(kadj, (N, N)) < 0.1).astype(jnp.float32)
    a = jnp.maximum(a, a.T) + jnp.eye(N, dtype=jnp.float32)
    adj = a / jnp.sum(a, axis=1, keepdims=True)

    # GraphConvolution.reset_parameters(): uniform(-stdv, stdv), stdv = 1/sqrt(out)
    stdv1 = 1.0 / math.sqrt(HIDDEN_DIM)
    w1 = jax.random.uniform(
        kw1, (NUM_FEATURE, HIDDEN_DIM), minval=-stdv1, maxval=stdv1, dtype=jnp.float32)
    stdv2 = 1.0 / math.sqrt(NUM_CLASS)
    w2 = jax.random.uniform(
        kw2, (HIDDEN_DIM, NUM_CLASS), minval=-stdv2, maxval=stdv2, dtype=jnp.float32)

    ref = gnnq_reference(x, adj, w1, w2)

    # Small-graph fused path (what a demo-scale graph dispatches to).
    fwd = build_gnnq_forward(adj, num_feature=NUM_FEATURE, hidden_dim=HIDDEN_DIM,
                             num_class=NUM_CLASS)
    out = jax.block_until_ready(fwd(x, w1, w2))
    assert out.shape == (N, NUM_CLASS)
    assert jnp.allclose(out, ref, atol=2e-2, rtol=5e-2), "fused path mismatch vs reference"

    # Streamed (row-tiled) path -- same semantics, exercised explicitly.
    fwd_s = build_gnnq_forward(adj, num_feature=NUM_FEATURE, hidden_dim=HIDDEN_DIM,
                               num_class=NUM_CLASS, force_streamed=True)
    out_s = jax.block_until_ready(fwd_s(x, w1, w2))
    assert out_s.shape == (N, NUM_CLASS)
    assert jnp.allclose(out_s, ref, atol=2e-2, rtol=5e-2), "streamed path mismatch vs reference"

    print("KERNEL_OK")
</pallas_src>

<mosaic_0001>
module attributes {stable_mosaic.version = 11 : i64} {
  func.func @_fused_kernel(%arg0: memref<64x32xbf16, #tpu.memory_space<vmem>>, %arg1: memref<64x64xbf16, #tpu.memory_space<vmem>>, %arg2: memref<32x32xbf16, #tpu.memory_space<vmem>>, %arg3: memref<32x128xf32, #tpu.memory_space<vmem>>, %arg4: memref<64x128xf32, #tpu.memory_space<vmem>>) attributes {dimension_semantics = [], scalar_prefetch = 0 : i64, scratch_operands = 0 : i64, tpu.core_type = #tpu.core_type<tc>} {
    %c0 = arith.constant 0 : index
    %c0_0 = arith.constant 0 : index
    %0 = vector.load %arg0[%c0, %c0_0] : memref<64x32xbf16, #tpu.memory_space<vmem>>, vector<64x32xbf16>
    %c0_1 = arith.constant 0 : index
    %c0_2 = arith.constant 0 : index
    %1 = vector.load %arg2[%c0_1, %c0_2] : memref<32x32xbf16, #tpu.memory_space<vmem>>, vector<32x32xbf16>
    %cst = arith.constant dense<0.000000e+00> : vector<64x32xf32>
    %2 = tpu.matmul %0, %1, %cst {dimension_numbers = #tpu.dot_dimension_numbers<[1], [0], [0], [1], [0, 0, 1, 1], [], []>} : vector<64x32xbf16>, vector<32x32xbf16>, vector<64x32xf32> -> vector<64x32xf32>
    %c0_3 = arith.constant 0 : index
    %c0_4 = arith.constant 0 : index
    %3 = vector.load %arg1[%c0_3, %c0_4] : memref<64x64xbf16, #tpu.memory_space<vmem>>, vector<64x64xbf16>
    %4 = arith.truncf %2 : vector<64x32xf32> to vector<64x32xbf16>
    %cst_5 = arith.constant dense<0.000000e+00> : vector<64x32xf32>
    %5 = tpu.matmul %3, %4, %cst_5 {dimension_numbers = #tpu.dot_dimension_numbers<[1], [0], [0], [1], [0, 0, 1, 1], [], []>} : vector<64x64xbf16>, vector<64x32xbf16>, vector<64x32xf32> -> vector<64x32xf32>
    %cst_6 = arith.constant 0.000000e+00 : f32
    %6 = vector.broadcast %cst_6 : f32 to vector<64x32xf32>
    %7 = arith.maximumf %5, %6 : vector<64x32xf32>
    %c0_7 = arith.constant 0 : index
    %c0_8 = arith.constant 0 : index
    %8 = vector.load %arg3[%c0_7, %c0_8] : memref<32x128xf32, #tpu.memory_space<vmem>>, vector<32x128xf32>
    %cst_9 = arith.constant dense<0.000000e+00> : vector<64x128xf32>
    %9 = tpu.matmul %7, %8, %cst_9 {dimension_numbers = #tpu.dot_dimension_numbers<[1], [0], [0], [1], [0, 0, 1, 1], [], []>} : vector<64x32xf32>, vector<32x128xf32>, vector<64x128xf32> -> vector<64x128xf32>
    %c0_10 = arith.constant 0 : index
    %c0_11 = arith.constant 0 : index
    %10 = vector.load %arg1[%c0_10, %c0_11] : memref<64x64xbf16, #tpu.memory_space<vmem>>, vector<64x64xbf16>
    %11 = arith.extf %10 : vector<64x64xbf16> to vector<64x64xf32>
    %cst_12 = arith.constant dense<0.000000e+00> : vector<64x128xf32>
    %12 = tpu.matmul %11, %9, %cst_12 {dimension_numbers = #tpu.dot_dimension_numbers<[1], [0], [0], [1], [0, 0, 1, 1], [], []>} : vector<64x64xf32>, vector<64x128xf32>, vector<64x128xf32> -> vector<64x128xf32>
    %c0_13 = arith.constant 0 : index
    %c0_14 = arith.constant 0 : index
    %13 = vector.load %arg4[%c0_13, %c0_14] : memref<64x128xf32, #tpu.memory_space<vmem>>, vector<64x128xf32>
    tpu.vector_store %arg4[%c0_13, %c0_14], %12 {strides = array<i32>} : memref<64x128xf32, #tpu.memory_space<vmem>>, vector<64x128xf32>,
    return
  }
}

</mosaic_0001>

<bundles_post_ra>
// kernel: _gnnq_forward_impl.1
= control target key start
LH: loop header
LB: loop body
LE: loop exit
PB: predicated region body
PF: predicated region fallthrough
CT: control target
= control target key end

     0   :  { %vm62_vm0 = vcmask 261120   ;;  %vm172_vm1 = vcmask 523264   ;;  %s873_s2 = inlined_call_operand.vmem [shape: bf16[32,32], index: 2, kind: input, shape index: {}]   ;;  %s874_s0 = inlined_call_operand.vmem [shape: bf16[64,32], index: 0, kind: input, shape index: {}]   ;;  %s875_s1 = inlined_call_operand.vmem [shape: bf16[64,64], index: 1, kind: input, shape index: {}]   ;;  %s876_s3 = inlined_call_operand.vmem [shape: f32[32,128], index: 3, kind: input, shape index: {}]   ;;  %s877_s4 = inlined_call_operand.vmem [shape: f32[64,128], index: 4, kind: output, shape index: {}]  }
   0x1   :  { %v724_v0 = vld [vmem:[%s873_s2] sm:$0xff]   ;;  %v725_v1 = vld [vmem:[%s873_s2 + $0x8] sm:$0xff]   ;;  %v728_v4 = vld [vmem:[%s874_s0 + $0x10] sm:$0xff]  }
   0x2   :  { %616 = vmatprep.subr.bf16.mxu0 %v724_v0  ;;  %v726_v2 = vld [vmem:[%s874_s0] sm:$0xff]   ;;  %v727_v3 = vld [vmem:[%s874_s0 + $0x8] sm:$0xff]   ;;  %v729_v5 = vld [vmem:[%s874_s0 + $0x18] sm:$0xff]  }
   0x3   :  { %617 = vmatpush3.bf16.msra.mxu0 %v724_v0  ;;  %620 = vmatprep.mubr.msk.bf16.mxu0 %vm62_vm0, %v726_v2  ;;  %v788_v6 = vld [vmem:[%s875_s1] sm:$0xff]   ;;  %v259_v8 = vld [vmem:[%s876_s3 + $0x8] sm:$0xff]  ;;  %v260_v9 = vld [vmem:[%s876_s3 + $0x10] sm:$0xff] }
   0x4   :  { %618 = vmatprep.subr.bf16.mxu0 %v725_v1  ;;  %636 = vmatprep.mubr.msk.bf16.mxu1 %vm172_vm1, %v788_v6  ;;  %v258_v7 = vld [vmem:[%s876_s3] sm:$0xff]  ;;  %v261_v11 = vld [vmem:[%s876_s3 + $0x18] sm:$0xff]  ;;  %v807_v25 = vld [vmem:[%s875_s1 + $0x8] sm:$0xff]   ;;  %v391_v43 = vunpack.c.l.bf16 %v788_v6  ;;  %v392_v58 = vunpack.c.h.bf16 %v788_v6 }
   0x5   :  { %v692_v10 = vpack.c.bf16 %v259_v8, %v258_v7  ;;  %v696_v12 = vpack.c.bf16 %v261_v11, %v260_v9  ;;  %v812_v26 = vld [vmem:[%s875_s1 + $0x10] sm:$0xff]   ;;  %v821_v27 = vld [vmem:[%s875_s1 + $0x18] sm:$0xff]   ;;  %v393_v45 = vunpack.c.l.bf16 %v807_v25  ;;  %v394_v59 = vunpack.c.h.bf16 %v807_v25 }
   0x6   :  { %v395_v60 = vunpack.c.l.bf16 %v812_v26  ;;  %v396_v61 = vunpack.c.h.bf16 %v812_v26  ;;  %v397_v62 = vunpack.c.l.bf16 %v821_v27  ;;  %v398_v63 = vunpack.c.h.bf16 %v821_v27 }
   0x7   :  { %619 = vmatpush3.bf16.msra.mxu0 %v725_v1 }
   0x8   :  { %693 = vmatprep.subr.bf16.mxu0 %v692_v10 }
   0xa   :  { %621 = vmatmul.mubr.msk.bf16.vlgmr.msra.gmra.mrb[0].mxu0 %vm62_vm0, %v727_v3 }
   0xb   :  { %624 = vmatprep.mubr.msk.bf16.mxu0 %vm62_vm0, %v728_v4  ;;  %695 = vmatpush3.bf16.msra.mxu0 %v692_v10 }
   0xc   :  { %697 = vmatprep.subr.bf16.mxu0 %v696_v12 }
   0xf   :  { %699 = vmatpush3.bf16.msra.mxu0 %v696_v12 }
  0x12   :  { %625 = vmatmul.mubr.msk.bf16.gmra.mrb[4].mxu0 %vm62_vm0, %v729_v5 }
  0xdd   :  { %v622_v13 = vpop.f32.mrb[0].mxu0 }
  0xde   :  { %v109_v14 = vpop.f32.mrb[1].mxu0 }
  0xdf   :  { %v623_v15 = vpop.f32.mrb[2].mxu0 }
  0xe0   :  { %v149_v16 = vpack.c.bf16 %v623_v15, %v622_v13  ;;  %v112_v17 = vpop.f32.mrb[3].mxu0 }
  0xe1   :  { %v148_v18 = vpack.c.bf16 %v112_v17, %v109_v14 }
  0xe3   :  { %628 = vmatprep.subr.bf16.mxu1 %v148_v18 }
  0xe4   :  { %629 = vmatpush3.bf16.msra.mxu1 %v148_v18 }
  0xe5   :  { %v626_v19 = vpop.f32.mrb[4].mxu0  ;;  %630 = vmatprep.subr.bf16.mxu1 %v149_v16 }
  0xe6   :  { %v125_v20 = vpop.f32.mrb[5].mxu0 }
  0xe7   :  { %v627_v21 = vpop.f32.mrb[6].mxu0 }
  0xe8   :  { %v151_v22 = vpack.c.bf16 %v627_v21, %v626_v19  ;;  %v128_v23 = vpop.f32.mrb[7].mxu0  ;;  %631 = vmatpush3.bf16.msra.mxu1 %v149_v16 }
  0xe9   :  { %v150_v24 = vpack.c.bf16 %v128_v23, %v125_v20 }
  0xeb   :  { %632 = vmatprep.subr.bf16.mxu1 %v150_v24 }
  0xec   :  { %633 = vmatpush3.bf16.msra.mxu1 %v150_v24 }
  0xed   :  { %634 = vmatprep.subr.bf16.mxu1 %v151_v22 }
  0xf0   :  { %635 = vmatpush3.bf16.msra.mxu1 %v151_v22 }
  0xf3   :  { %637 = vmatmul.mubr.msk.bf16.vlgmr.msra.gmra.mrb[0].mxu1 %vm172_vm1, %v807_v25 }
  0xf4   :  { %640 = vmatprep.mubr.msk.bf16.mxu1 %vm172_vm1, %v812_v26 }
  0xfb   :  { %641 = vmatmul.mubr.msk.bf16.gmra.mrb[4].mxu1 %vm172_vm1, %v821_v27 }
  0xfc   :  { %683 = vmatprep.mubr.msk.f32.mxu1 %vm172_vm1, %v393_v45 }
 0x1c6   :  { %v638_v28 = vpop.f32.mrb[0].mxu1 }
 0x1c7   :  { %v219_v29 = vpop.f32.mrb[1].mxu1  ;;  %v252_v34 = vmax.f32 %v638_v28, 0.0 }
 0x1c8   :  { %v250_v30 = vmax.f32 %v219_v29, 0.0  ;;  %v639_v31 = vpop.f32.mrb[2].mxu1 }
 0x1c9   :  { %v222_v32 = vpop.f32.mrb[3].mxu1  ;;  %v253_v35 = vmax.f32 %v639_v31, 0.0 }
 0x1ca   :  { %v251_v33 = vmax.f32 %v222_v32, 0.0  ;;  %652 = vmatprep.mubr.msk.f32.mxu0 %vm62_vm0, %v250_v30 }
 0x1cc   :  { %653 = vmatmul.mubr.msk.f32.vlgmr.msra.gmra.mrb[8].mxu0 %vm62_vm0, %v251_v33 }
 0x1cd   :  { %655 = vmatprep.mubr.msk.f32.mxu0 %vm62_vm0, %v252_v34 }
 0x1ce   :  { %v642_v36 = vpop.f32.mrb[4].mxu1 }
 0x1cf   :  { %v235_v37 = vpop.f32.mrb[5].mxu1  ;;  %v256_v42 = vmax.f32 %v642_v36, 0.0 }
 0x1d0   :  { %v254_v38 = vmax.f32 %v235_v37, 0.0  ;;  %v643_v39 = vpop.f32.mrb[6].mxu1  ;;  %656 = vmatmul.mubr.msk.f32.gmra.mrb[10].mxu0 %vm62_vm0, %v253_v35 }
 0x1d1   :  { %v238_v40 = vpop.f32.mrb[7].mxu1  ;;  %v257_v44 = vmax.f32 %v643_v39, 0.0 }
 0x1d2   :  { %v255_v41 = vmax.f32 %v238_v40, 0.0  ;;  %658 = vmatprep.mubr.msk.f32.mxu0 %vm62_vm0, %v254_v38 }
 0x1d4   :  { %659 = vmatmul.mubr.msk.f32.gmra.mrb[12].mxu0 %vm62_vm0, %v255_v41 }
 0x1d5   :  { %661 = vmatprep.mubr.msk.f32.mxu0 %vm62_vm0, %v256_v42 }
 0x1d8   :  { %662 = vmatmul.mubr.msk.f32.gmra.mrb[14].mxu0 %vm62_vm0, %v257_v44 }
 0x1d9   :  { %680 = vmatprep.mubr.msk.f32.mxu0 %vm172_vm1, %v391_v43 }
 0x29f   :  { %v654_v46 = vpop.f32.mrb[8].mxu0 }
 0x2a0   :  { %v352_v47 = vpop.f32.mrb[9].mxu0 }
 0x2a1   :  { %v700_v48 = vpack.c.bf16 %v654_v46, %v352_v47 }
 0x2a3   :  { %v657_v49 = vpop.f32.mrb[10].mxu0  ;;  %701 = vmatprep.subr.bf16.mxu0 %v700_v48  ;;  %716 = vmatprep.subr.bf16.mxu1 %v700_v48 }
 0x2a4   :  { %v362_v50 = vpop.f32.mrb[11].mxu0  ;;  %703 = vmatpush3.bf16.msra.mxu0 %v700_v48  ;;  %720 = vmatpush3.bf16.msra.mxu1 %v700_v48 }
 0x2a5   :  { %v704_v51 = vpack.c.bf16 %v657_v49, %v362_v50 }
 0x2a7   :  { %v660_v52 = vpop.f32.mrb[12].mxu0  ;;  %705 = vmatprep.subr.bf16.mxu0 %v704_v51  ;;  %717 = vmatprep.subr.bf16.mxu1 %v704_v51 }
 0x2a8   :  { %v372_v53 = vpop.f32.mrb[13].mxu0  ;;  %707 = vmatpush3.bf16.msra.mxu0 %v704_v51  ;;  %721 = vmatpush3.bf16.msra.mxu1 %v704_v51 }
 0x2a9   :  { %v708_v54 = vpack.c.bf16 %v660_v52, %v372_v53 }
 0x2ab   :  { %v663_v55 = vpop.f32.mrb[14].mxu0  ;;  %709 = vmatprep.subr.bf16.mxu0 %v708_v54  ;;  %718 = vmatprep.subr.bf16.mxu1 %v708_v54 }
 0x2ac   :  { %v382_v56 = vpop.f32.mrb[15].mxu0  ;;  %711 = vmatpush3.bf16.msra.mxu0 %v708_v54  ;;  %722 = vmatpush3.bf16.msra.mxu1 %v708_v54 }
 0x2ad   :  { %v712_v57 = vpack.c.bf16 %v663_v55, %v382_v56 }
 0x2af   :  { %713 = vmatprep.subr.bf16.mxu0 %v712_v57  ;;  %719 = vmatprep.subr.bf16.mxu1 %v712_v57 }
 0x2b0   :  { %715 = vmatpush3.bf16.msra.mxu0 %v712_v57  ;;  %723 = vmatpush3.bf16.msra.mxu1 %v712_v57 }
 0x2b3   :  { %684 = vmatmul.mubr.msk.f32.vlgmr.msra.gmra.mrb[8].mxu1 %vm172_vm1, %v394_v59  ;;  %681 = vmatmul.mubr.msk.f32.vlgmr.msra.gmra.mrb[16].mxu0 %vm172_vm1, %v392_v58 }
 0x2b4   :  { %686 = vmatprep.mubr.msk.f32.mxu1 %vm172_vm1, %v395_v60 }
 0x2b7   :  { %687 = vmatmul.mubr.msk.f32.gmra.mrb[10].mxu1 %vm172_vm1, %v396_v61 }
 0x2b8   :  { %689 = vmatprep.mubr.msk.f32.mxu1 %vm172_vm1, %v397_v62 }
 0x2bb   :  { %690 = vmatmul.mubr.msk.f32.gmra.mrb[12].mxu1 %vm172_vm1, %v398_v63 }
 0x386   :  { %v685_v0 = vpop.f32.mrb[8].mxu1  ;;  %v682_v1 = vpop.f32.mrb[16].mxu0 }
 0x387   :  { %531 = vst [vmem:[%s877_s4 + $0x18] sm:$0xff] %v685_v0  ;;  %v499_v2 = vpop.f32.mrb[9].mxu1  ;;  %529 = vst [vmem:[%s877_s4 + $0x8] sm:$0xff] %v682_v1  ;;  %v489_v3 = vpop.f32.mrb[17].mxu0 }
 0x388   :  { %530 = vst [vmem:[%s877_s4 + $0x10] sm:$0xff] %v499_v2  ;;  %528 = vst [vmem:[%s877_s4] sm:$0xff] %v489_v3 }
 0x38a   :  { %v688_v4 = vpop.f32.mrb[10].mxu1 }
 0x38b   :  { %533 = vst [vmem:[%s877_s4 + $0x28] sm:$0xff] %v688_v4  ;;  %v509_v5 = vpop.f32.mrb[11].mxu1 }
 0x38c   :  { %532 = vst [vmem:[%s877_s4 + $0x20] sm:$0xff] %v509_v5 }
 0x38e   :  { %v691_v6 = vpop.f32.mrb[12].mxu1 }
 0x38f   :  { %535 = vst [vmem:[%s877_s4 + $0x38] sm:$0xff] %v691_v6  ;;  %v519_v7 = vpop.f32.mrb[13].mxu1 }
 0x390   :  { %534 = vst [vmem:[%s877_s4 + $0x30] sm:$0xff] %v519_v7 }

</bundles_post_ra>
